<compile_context>
chip_gen: v5e
topology: v5e:2x2
jax: 0.10.0
libtpu: 0.0.40
codegen_flags: <defaults>
</compile_context>

<pallas_src>
import functools

import jax
import jax.numpy as jnp
from jax.experimental import pallas as pl
from jax.experimental.pallas import tpu as pltpu

D_IN, D_H1, D_H2, D_OUT = 9, 16, 8, 1
_LANE = 128
_TB_CAP = 16384            # (tb, 9) f32 block stores as (tb, 128) in VMEM: 512 B/row
_SLAB_R, _SLAB_C = 32, 32  # packed-parameter slab shape


def mlp_kernel(x_ref, p_ref, o_ref):
    """One (tb, 9) batch tile of the fused MLP; output tile is (1, tb)."""
    x = x_ref[...]                                        # (tb, 9), batch on sublanes

    # Unpack the parameter slab (static slices of the VMEM-resident (32, 32) tile).
    w1 = p_ref[0:D_H1, 0:D_IN]                            # (16, 9)
    b1 = p_ref[0:D_H1, D_IN:D_IN + 1]                     # (16, 1)
    w2 = p_ref[D_H1:D_H1 + D_H2, 0:D_H1]                  # (8, 16)
    b2 = p_ref[D_H1:D_H1 + D_H2, D_H1:D_H1 + 1]           # (8, 1)
    w3t = p_ref[D_H1 + D_H2:D_H1 + 2 * D_H2, 0:1]         # (8, 1)
    b3 = p_ref[D_H1 + D_H2:D_H1 + D_H2 + 1, 1:2]          # (1, 1)

    # Layer 1 (MXU): contract the 9-wide feature axis of BOTH operands
    # (w1 @ x^T), so the result lands feature-major: (16, tb), batch on lanes.
    h1 = jax.lax.dot_general(w1, x, (((1,), (1,)), ((), ())),
                             preferred_element_type=jnp.float32)
    h1 = jnp.maximum(h1 + b1, 0.0)                        # bias broadcasts over lanes
    # Layer 2 (MXU): (8, 16) @ (16, tb) -> (8, tb)
    h2 = jnp.dot(w2, h1, preferred_element_type=jnp.float32)
    h2 = jnp.maximum(h2 + b2, 0.0)
    # Layer 3 on VPU + sublane reduce: (8,1)*(8,tb) -> (1, tb); keeps the MXU out
    # of a nearly-empty 8->1 contraction and keeps the output lane-dense.
    out = jnp.sum(w3t * h2, axis=0, keepdims=True) + b3
    o_ref[...] = out.astype(o_ref.dtype)


def _pack_params(params):
    """Pack (w1,b1,w2,b2,w3,b3) (torch nn.Linear layout) into one (32,32) slab."""
    w1, b1, w2, b2, w3, b3 = params
    slab = jnp.zeros((_SLAB_R, _SLAB_C), jnp.float32)
    slab = slab.at[0:D_H1, 0:D_IN].set(w1.astype(jnp.float32))
    slab = slab.at[0:D_H1, D_IN].set(b1.astype(jnp.float32))
    slab = slab.at[D_H1:D_H1 + D_H2, 0:D_H1].set(w2.astype(jnp.float32))
    slab = slab.at[D_H1:D_H1 + D_H2, D_H1].set(b2.astype(jnp.float32))
    slab = slab.at[D_H1 + D_H2:D_H1 + 2 * D_H2, 0].set(w3[0].astype(jnp.float32))
    slab = slab.at[D_H1 + D_H2, 1].set(b3[0].astype(jnp.float32))
    return slab


def _pick_tile(batch, tb):
    """Lane-aligned batch tile + step count (even step count when >1, for v7x)."""
    tb = max(_LANE, (int(tb) // _LANE) * _LANE)
    tb = min(tb, _TB_CAP)
    tb = min(tb, pl.cdiv(batch, _LANE) * _LANE)
    steps = pl.cdiv(batch, tb)
    if steps > 1 and steps % 2 == 1:
        tb = pl.cdiv(pl.cdiv(batch, steps + 1), _LANE) * _LANE
        steps = pl.cdiv(batch, tb)
    return tb, steps


@functools.partial(jax.jit, static_argnames=("tb",))
def mlp_forward(x, params, *, tb=8192):
    """x: (B, 9) float32 -> (B, 1) float32.  Any B (ragged tail handled by Pallas)."""
    B = x.shape[0]
    x = x.astype(jnp.float32)
    slab = _pack_params(params)
    tb_eff, n_steps = _pick_tile(B, tb)

    out = pl.pallas_call(
        mlp_kernel,
        out_shape=jax.ShapeDtypeStruct((D_OUT, B), jnp.float32),
        grid=(n_steps,),
        in_specs=[
            pl.BlockSpec((tb_eff, D_IN), lambda i: (i, 0)),      # contiguous x rows
            pl.BlockSpec((_SLAB_R, _SLAB_C), lambda i: (0, 0)),  # packed params (resident)
        ],
        out_specs=pl.BlockSpec((D_OUT, tb_eff), lambda i: (0, i)),  # lane-dense (1, tb)
        compiler_params=pltpu.CompilerParams(
            dimension_semantics=("parallel",),            # megacore split on v7x
            vmem_limit_bytes=32 * 1024 * 1024),           # safe on v5e/v6e/v7x for tb cap
    )(x, slab)

    return out.reshape(B, D_OUT)                          # (1, B) -> (B, 1): free reshape


def init_params(key):
    """Deterministic synthetic parameters in torch nn.Linear layout."""
    k1, k2, k3, k4, k5, k6 = jax.random.split(key, 6)
    w1 = jax.random.normal(k1, (D_H1, D_IN), jnp.float32) * 0.1
    b1 = jax.random.normal(k2, (D_H1,), jnp.float32) * 0.1
    w2 = jax.random.normal(k3, (D_H2, D_H1), jnp.float32) * 0.1
    b2 = jax.random.normal(k4, (D_H2,), jnp.float32) * 0.1
    w3 = jax.random.normal(k5, (D_OUT, D_H2), jnp.float32) * 0.1
    b3 = jax.random.normal(k6, (D_OUT,), jnp.float32) * 0.1
    return (w1, b1, w2, b2, w3, b3)


def reference_forward(x, params):
    w1, b1, w2, b2, w3, b3 = params
    h1 = jnp.maximum(x @ w1.T + b1, 0.0)
    h2 = jnp.maximum(h1 @ w2.T + b2, 0.0)
    return h2 @ w3.T + b3


if __name__ == "__main__":
    key = jax.random.PRNGKey(0)
    kx, kx2, kp = jax.random.split(key, 3)
    params = init_params(kp)

    # Small batch, not a multiple of 128 -> single ragged grid step.
    x_small = jax.random.normal(kx, (200, D_IN), jnp.float32)
    out_small = jax.block_until_ready(mlp_forward(x_small, params))
    ref_small = reference_forward(x_small, params)
    assert out_small.shape == (200, D_OUT)
    assert jnp.allclose(out_small, ref_small, atol=1e-4, rtol=1e-4)

    # Larger batch -> multi-step "parallel" grid; tile auto-shrinks to 768 so the
    # grid has 4 (even) steps, and the last block is ragged (3000 % 768 != 0).
    x_big = jax.random.normal(kx2, (3000, D_IN), jnp.float32)
    out_big = jax.block_until_ready(mlp_forward(x_big, params, tb=1024))
    ref_big = reference_forward(x_big, params)
    assert out_big.shape == (3000, D_OUT)
    assert jnp.allclose(out_big, ref_big, atol=1e-4, rtol=1e-4)

    print("KERNEL_OK")
</pallas_src>

<mosaic_0001>
module attributes {stable_mosaic.version = 11 : i64} {
  func.func @mlp_kernel(%arg0: i32, %arg1: memref<256x9xf32, #tpu.memory_space<vmem>>, %arg2: memref<32x32xf32, #tpu.memory_space<vmem>>, %arg3: memref<1x256xf32, #tpu.memory_space<vmem>>) attributes {dimension_semantics = [#tpu.dimension_semantics<parallel>], iteration_bounds = array<i64: 1>, scalar_prefetch = 0 : i64, scratch_operands = 0 : i64, tpu.core_type = #tpu.core_type<tc>, window_params = [{transform_indices = @transform_0, window_bounds = array<i64: 256, 9>}, {pipeline_mode = #tpu.pipeline_mode<synchronous>, transform_indices = @transform_1, window_bounds = array<i64: 32, 32>}, {transform_indices = @transform_2, window_bounds = array<i64: 1, 256>}]} {
    %c0 = arith.constant 0 : index
    %c0_0 = arith.constant 0 : index
    %0 = vector.load %arg1[%c0, %c0_0] : memref<256x9xf32, #tpu.memory_space<vmem>>, vector<256x9xf32>
    %c0_1 = arith.constant 0 : index
    %c0_2 = arith.constant 0 : index
    %1 = vector.load %arg2[%c0_1, %c0_2] : memref<32x32xf32, #tpu.memory_space<vmem>>, vector<16x9xf32>
    %c0_3 = arith.constant 0 : index
    %c9 = arith.constant 9 : index
    %2 = vector.load %arg2[%c0_3, %c9] : memref<32x32xf32, #tpu.memory_space<vmem>>, vector<16x1xf32>
    %c16 = arith.constant 16 : index
    %c0_4 = arith.constant 0 : index
    %3 = vector.load %arg2[%c16, %c0_4] : memref<32x32xf32, #tpu.memory_space<vmem>>, vector<8x16xf32>
    %c16_5 = arith.constant 16 : index
    %c16_6 = arith.constant 16 : index
    %4 = vector.load %arg2[%c16_5, %c16_6] : memref<32x32xf32, #tpu.memory_space<vmem>>, vector<8x1xf32>
    %c24 = arith.constant 24 : index
    %c0_7 = arith.constant 0 : index
    %5 = vector.load %arg2[%c24, %c0_7] : memref<32x32xf32, #tpu.memory_space<vmem>>, vector<8x1xf32>
    %c24_8 = arith.constant 24 : index
    %c1 = arith.constant 1 : index
    %6 = vector.load %arg2[%c24_8, %c1] : memref<32x32xf32, #tpu.memory_space<vmem>>, vector<1x1xf32>
    %cst = arith.constant dense<0.000000e+00> : vector<16x256xf32>
    %7 = tpu.matmul %1, %0, %cst {dimension_numbers = #tpu.dot_dimension_numbers<[1], [1], [0], [0], [0, 0, 1, 0], [], []>} : vector<16x9xf32>, vector<256x9xf32>, vector<16x256xf32> -> vector<16x256xf32>
    %8 = vector.broadcast %2 : vector<16x1xf32> to vector<16x256xf32>
    %9 = arith.addf %7, %8 : vector<16x256xf32>
    %cst_9 = arith.constant 0.000000e+00 : f32
    %10 = vector.broadcast %cst_9 : f32 to vector<16x256xf32>
    %11 = arith.maximumf %9, %10 : vector<16x256xf32>
    %cst_10 = arith.constant dense<0.000000e+00> : vector<8x256xf32>
    %12 = tpu.matmul %3, %11, %cst_10 {dimension_numbers = #tpu.dot_dimension_numbers<[1], [0], [0], [1], [0, 0, 1, 1], [], []>} : vector<8x16xf32>, vector<16x256xf32>, vector<8x256xf32> -> vector<8x256xf32>
    %13 = vector.broadcast %4 : vector<8x1xf32> to vector<8x256xf32>
    %14 = arith.addf %12, %13 : vector<8x256xf32>
    %cst_11 = arith.constant 0.000000e+00 : f32
    %15 = vector.broadcast %cst_11 : f32 to vector<8x256xf32>
    %16 = arith.maximumf %14, %15 : vector<8x256xf32>
    %17 = vector.broadcast %5 : vector<8x1xf32> to vector<8x256xf32>
    %18 = arith.mulf %17, %16 : vector<8x256xf32>
    %cst_12 = arith.constant dense<0.000000e+00> : vector<256xf32>
    %19 = vector.multi_reduction <add>, %18, %cst_12 [0] : vector<8x256xf32> to vector<256xf32>
    %20 = vector.shape_cast %19 : vector<256xf32> to vector<1x256xf32>
    %21 = vector.broadcast %6 : vector<1x1xf32> to vector<1x256xf32>
    %22 = arith.addf %20, %21 : vector<1x256xf32>
    %c0_13 = arith.constant 0 : index
    %c0_14 = arith.constant 0 : index
    %23 = vector.load %arg3[%c0_13, %c0_14] : memref<1x256xf32, #tpu.memory_space<vmem>>, vector<1x256xf32>
    tpu.vector_store %arg3[%c0_13, %c0_14], %22 {strides = array<i32>} : memref<1x256xf32, #tpu.memory_space<vmem>>, vector<1x256xf32>,
    return
  }
  func.func @transform_0(%arg0: i32) -> (i32, i32) {
    %c0_i32 = arith.constant 0 : i32
    %c0_i32_0 = arith.constant 0 : i32
    return %arg0, %c0_i32 : i32, i32
  }
  func.func @transform_1(%arg0: i32) -> (i32, i32) {
    %c0_i32 = arith.constant 0 : i32
    %c0_i32_0 = arith.constant 0 : i32
    %c0_i32_1 = arith.constant 0 : i32
    return %c0_i32, %c0_i32_0 : i32, i32
  }
  func.func @transform_2(%arg0: i32) -> (i32, i32) {
    %c0_i32 = arith.constant 0 : i32
    %c0_i32_0 = arith.constant 0 : i32
    return %c0_i32, %arg0 : i32, i32
  }
}

</mosaic_0001>

<bundles_post_ra>
// kernel: mlp_forward.1
= control target key start
LH: loop header
LB: loop body
LE: loop exit
PB: predicated region body
PF: predicated region fallthrough
CT: control target
= control target key end

     0   :  { %vm59_vm0 = vcmask 72704   ;;  %s557_s0 = inlined_call_operand.vmem [shape: f32[200,9], index: 0, kind: input, shape index: {}]   ;;  %s558_s1 = inlined_call_operand.vmem [shape: f32[32,32], index: 1, kind: input, shape index: {}]   ;;  %s559_s2 = inlined_call_operand.hbm [shape: f32[1,200], index: 2, kind: output, shape index: {}]  }
   0x1   :  { %v27_v0 = vld [vmem:[%s557_s0 + $0x78] sm:$0xff]  ;;  %v26_v2 = vld [vmem:[%s557_s0 + $0x70] sm:$0xff]  ;;  %v25_v4 = vld [vmem:[%s557_s0 + $0x68] sm:$0xff] }
   0x2   :  { %v43_v1 = vld [vmem:[%s557_s0 + $0xf8] sm:$0xff]  ;;  %313 = vmatpush.xpose.msk.msra.mxu0 %vm59_vm0, %v27_v0  ;;  %v42_v3 = vld [vmem:[%s557_s0 + $0xf0] sm:$0xff]  ;;  %v41_v5 = vld [vmem:[%s557_s0 + $0xe8] sm:$0xff] }
   0x3   :  { %331 = vmatpush.xpose.msk.msra.mxu1 %vm59_vm0, %v43_v1 }
   0x6   :  { %314 = vmatpush.xpose.msk.msra.mxu0 %vm59_vm0, %v26_v2 }
   0x7   :  { %332 = vmatpush.xpose.msk.msra.mxu1 %vm59_vm0, %v42_v3 }
   0x8   :  { %7 = vsyncpa [#allocation3], 0  ;;  %v24_v6 = vld [vmem:[%s557_s0 + $0x60] sm:$0xff]  ;;  %v23_v8 = vld [vmem:[%s557_s0 + $0x58] sm:$0xff]  ;;  %v387_v21 = vmov 9   ;;  %v388_v37 = vmov 16  }
   0x9   :  { %v40_v7 = vld [vmem:[%s557_s0 + $0xe0] sm:$0xff]  ;;  %v39_v9 = vld [vmem:[%s557_s0 + $0xd8] sm:$0xff]  ;;  %v22_v10 = vld [vmem:[%s557_s0 + $0x50] sm:$0xff]  ;;  %356 = vset.pattern.permute.xlu0 %v387_v21  ;;  %357 = vset.pattern.permute.xlu1 %v388_v37  ;;  %v389_v38 = vmov 1   ;;  %v390_v40 = vmov 0   ;;  %vm215_vm1 = vcmask 130048  }
   0xa   :  { %315 = vmatpush.xpose.msk.msra.mxu0 %vm59_vm0, %v25_v4  ;;  %v38_v11 = vld [vmem:[%s557_s0 + $0xd0] sm:$0xff]  ;;  %v21_v12 = vld [vmem:[%s557_s0 + $0x48] sm:$0xff]  ;;  %v20_v14 = vld [vmem:[%s557_s0 + $0x40] sm:$0xff]  ;;  %359 = vset.pattern.permute.xlu2 %v389_v38  ;;  %s304_s29 = sshll.u32 %s559_s2, 4  ;;  %vm289_vm2 = vcmask 1040384   ;;  %s305_s29 = int_to_ptr.hbm [resolvable:$true] %s304_s29 }
   0xb   :  { %333 = vmatpush.xpose.msk.msra.mxu1 %vm59_vm0, %v41_v5  ;;  %v37_v13 = vld [vmem:[%s557_s0 + $0xc8] sm:$0xff]  ;;  %v36_v15 = vld [vmem:[%s557_s0 + $0xc0] sm:$0xff]  ;;  %v19_v16 = vld [vmem:[%s557_s0 + $0x38] sm:$0xff] }
   0xc   :  { %v35_v17 = vld [vmem:[%s557_s0 + $0xb8] sm:$0xff]  ;;  %v45_v18 = vld [vmem:[%s558_s1 + $0x8] sm:$0xff]  ;;  %v18_v19 = vld [vmem:[%s557_s0 + $0x30] sm:$0xff] }
   0xd   :  { %v34_v20 = vld [vmem:[%s557_s0 + $0xb0] sm:$0xff]  ;;  %56 = vperm.xlu0 %356, %v45_v18   ;;  %v17_v22 = vld [vmem:[%s557_s0 + $0x28] sm:$0xff]  ;;  %v16_v24 = vld [vmem:[%s557_s0 + $0x20] sm:$0xff] }
   0xe   :  { %316 = vmatpush.xpose.msk.msra.mxu0 %vm59_vm0, %v24_v6  ;;  %v33_v23 = vld [vmem:[%s557_s0 + $0xa8] sm:$0xff]  ;;  %v32_v25 = vld [vmem:[%s557_s0 + $0xa0] sm:$0xff]  ;;  %v15_v27 = vld [vmem:[%s557_s0 + $0x18] sm:$0xff] }
   0xf   :  { %334 = vmatpush.xpose.msk.msra.mxu1 %vm59_vm0, %v40_v7  ;;  %v44_v26 = vld [vmem:[%s558_s1] sm:$0xff]  ;;  %v31_v28 = vld [vmem:[%s557_s0 + $0x98] sm:$0xff]  ;;  %v14_v29 = vld [vmem:[%s557_s0 + $0x10] sm:$0xff] }
  0x10   :  { %v30_v30 = vld [vmem:[%s557_s0 + $0x90] sm:$0xff]  ;;  %v13_v31 = vld [vmem:[%s557_s0 + $0x8] sm:$0xff]  ;;  %v12_v33 = vld [vmem:[%s557_s0] sm:$0xff] }
  0x11   :  { %v29_v32 = vld [vmem:[%s557_s0 + $0x88] sm:$0xff]  ;;  %v28_v34 = vld [vmem:[%s557_s0 + $0x80] sm:$0xff]  ;;  %v48_v35 = vld [vmem:[%s558_s1 + $0x18] sm:$0x1] }
  0x12   :  { %317 = vmatpush.xpose.msk.msra.mxu0 %vm59_vm0, %v23_v8  ;;  %v46_v36 = vld [vmem:[%s558_s1 + $0x10] sm:$0xff]  ;;  %281 = vperm.xlu2 %359, %v48_v35   ;;  %v47_v39 = vld [vmem:[%s558_s1 + $0x18] sm:$0xff]  ;;  %s391_s1 = smov [#allocation2]  }
  0x13   :  { %335 = vmatpush.xpose.msk.msra.mxu1 %vm59_vm0, %v39_v9  ;;  %212 = vperm.xlu1 %357, %v46_v36   ;;  %s302_s26 = sshll.u32 %s391_s1, 4  ;;  %s303_s26 = int_to_ptr.vmem [resolvable:$true] %s302_s26 }
  0x15   :  { %51 = vperm.xlu0 %356, %v44_v26  }
  0x16   :  { %318 = vmatpush.xpose.msk.msra.mxu0 %vm59_vm0, %v22_v10 }
  0x17   :  { %336 = vmatpush.xpose.msk.msra.mxu1 %vm59_vm0, %v38_v11 }
  0x1a   :  { %319 = vmatpush.xpose.msk.msra.mxu0 %vm59_vm0, %v21_v12 }
  0x1b   :  { %337 = vmatpush.xpose.msk.msra.mxu1 %vm59_vm0, %v37_v13  ;;  %358 = vset.pattern.permute.xlu1 %v390_v40 }
  0x1c   :  { %262 = vperm.xlu1 %358, %v47_v39  }
  0x1d   :  { %360 = vset.pattern.permute.xlu0 %v389_v38 }
  0x1e   :  { %320 = vmatpush.xpose.msk.msra.mxu0 %vm59_vm0, %v20_v14  ;;  %v292_v14 = vlaneseq }
  0x1f   :  { %338 = vmatpush.xpose.msk.msra.mxu1 %vm59_vm0, %v36_v15 }
  0x20   :  { %vm294_vm3 = vcmp.lt.s32.totalorder %v292_v14, 256 }
  0x22   :  { %321 = vmatpush.xpose.msk.msra.mxu0 %vm59_vm0, %v19_v16 }
  0x23   :  { %339 = vmatpush.xpose.msk.msra.mxu1 %vm59_vm0, %v35_v17 }
  0x26   :  { %322 = vmatpush.xpose.msk.msra.mxu0 %vm59_vm0, %v18_v19 }
  0x27   :  { %340 = vmatpush.xpose.msk.msra.mxu1 %vm59_vm0, %v34_v20 }
  0x2a   :  { %323 = vmatpush.xpose.msk.msra.mxu0 %vm59_vm0, %v17_v22 }
  0x2b   :  { %341 = vmatpush.xpose.msk.msra.mxu1 %vm59_vm0, %v33_v23 }
  0x2e   :  { %324 = vmatpush.xpose.msk.msra.mxu0 %vm59_vm0, %v16_v24 }
  0x2f   :  { %342 = vmatpush.xpose.msk.msra.mxu1 %vm59_vm0, %v32_v25 }
  0x32   :  { %325 = vmatpush.xpose.msk.msra.mxu0 %vm59_vm0, %v15_v27 }
  0x33   :  { %343 = vmatpush.xpose.msk.msra.mxu1 %vm59_vm0, %v31_v28 }
  0x36   :  { %326 = vmatpush.xpose.msk.msra.mxu0 %vm59_vm0, %v14_v29 }
  0x37   :  { %344 = vmatpush.xpose.msk.msra.mxu1 %vm59_vm0, %v30_v30 }
  0x3a   :  { %327 = vmatpush.xpose.msk.msra.mxu0 %vm59_vm0, %v13_v31 }
  0x3b   :  { %345 = vmatpush.xpose.msk.msra.mxu1 %vm59_vm0, %v29_v32 }
  0x3e   :  { %328 = vmatpush.xpose.msk.msra.mxu0 %vm59_vm0, %v12_v33 }
  0x3f   :  { %346 = vmatpush.xpose.msk.msra.mxu1 %vm59_vm0, %v28_v34 }
  0x41   :  { %329 = vmatmul.msk.f32.vlgmr.msra.gmra.mxu0 %vm59_vm0, %v44_v26 }
  0x42   :  { %347 = vmatmul.msk.f32.vlgmr.msra.gmra.mxu1 %vm59_vm0, %v44_v26 }
  0x49   :  { %330 = vmatmul.msk.f32.gmra.mxu0 %vm59_vm0, %v45_v18 }
  0x4a   :  { %348 = vmatmul.msk.f32.gmra.mxu1 %vm59_vm0, %v45_v18 }
  0x6c   :  { %v282_v11 = vpop.permute.xlu2 %281 }
  0x7f   :  { %v57_v41 = vpop.permute.xlu0 %56 }
  0x85   :  { %v213_v55 = vpop.permute.xlu1 %212 }
  0x87   :  { %v52_v44 = vpop.permute.xlu0 %51 }
  0x8e   :  { %v263_v60 = vpop.permute.xlu1 %262 }
  0xbe   :  { %v177_v42 = vpop.f32.mrf.mxu0 }
  0xbf   :  { %v200_v43 = vpop.f32.mrf.mxu1  ;;  %v178_v47 = vadd.f32 %v177_v42, %v52_v44 }
  0xc0   :  { %v201_v48 = vadd.f32 %v200_v43, %v52_v44 }
  0xc1   :  { %v206_v53 = vmax.f32 %v178_v47, 0.0 }
  0xc2   :  { %v207_v54 = vmax.f32 %v201_v48, 0.0 }
  0xc6   :  { %v180_v45 = vpop.f32.mrf.mxu0 }
  0xc7   :  { %v203_v46 = vpop.f32.mrf.mxu1  ;;  %v181_v49 = vadd.f32 %v180_v45, %v57_v41 }
  0xc8   :  { %v204_v50 = vadd.f32 %v203_v46, %v57_v41 }
  0xc9   :  { %v208_v51 = vmax.f32 %v181_v49, 0.0 }
  0xca   :  { %v209_v52 = vmax.f32 %v204_v50, 0.0 }
  0xcb   :  { %232 = vmatpush.msra.mxu2 %v208_v51 }
  0xcc   :  { %252 = vmatpush.msra.mxu3 %v209_v52 }
  0xcd   :  { %233 = vmatpush.msra.mxu2 %v206_v53 }
  0xce   :  { %253 = vmatpush.msra.mxu3 %v207_v54  ;;  %349 = vmatmul.msk.f32.vlgmr.msra.gmra.mxu2 %vm215_vm1, %v46_v36 }
  0xcf   :  { %350 = vmatmul.msk.f32.vlgmr.msra.gmra.mxu3 %vm215_vm1, %v46_v36 }
 0x151   :  { %v235_v56 = vpop.f32.mrf.mxu2 }
 0x152   :  { %v255_v57 = vpop.f32.mrf.mxu3  ;;  %v236_v58 = vadd.f32 %v235_v56, %v213_v55 }
 0x153   :  { %v256_v59 = vadd.f32 %v255_v57, %v213_v55 }
 0x154   :  { %v258_v61 = vmax.f32 %v236_v58, 0.0 }
 0x155   :  { %v259_v62 = vmax.f32 %v256_v59, 0.0 }
 0x156   :  { %v265_v63 = vmul.f32 %v263_v60, %v258_v61 }
 0x157   :  { %v266_v0 = vmul.f32 %v263_v60, %v259_v62 }
 0x158   :  { %v267_v1 = vrot.slane %v265_v63, 4 }
 0x159   :  { %v273_v2 = vrot.slane %v266_v0, 4 }
 0x15a   :  { %v268_v3 = vadd.f32 %v267_v1, %v265_v63 }
 0x15b   :  { %v274_v4 = vadd.f32 %v273_v2, %v266_v0 }
 0x15c   :  { %v269_v5 = vrot.slane %v268_v3, 2 }
 0x15d   :  { %v275_v6 = vrot.slane %v274_v4, 2 }
 0x15e   :  { %v270_v7 = vadd.f32 %v269_v5, %v268_v3 }
 0x15f   :  { %v276_v8 = vadd.f32 %v275_v6, %v274_v4 }
 0x160   :  { %v271_v9 = vrot.slane %v270_v7, 1 }
 0x161   :  { %v277_v10 = vrot.slane %v276_v8, 1 }
 0x162   :  { %v272_v12 = vadd.f32 %v271_v9, %v270_v7 }
 0x163   :  { %v278_v13 = vadd.f32 %v277_v10, %v276_v8 }
 0x164   :  { %v284_v16 = vadd.f32 %v282_v11, %v272_v12 }
 0x165   :  { %v285_v15 = vadd.f32 %v282_v11, %v278_v13 }
 0x167   :  { %v288_v17 = vrot.slane %v285_v15, 7 }
 0x169   :  { %v290_v18 = vsel %vm289_vm2, %v284_v16, %v288_v17 }
 0x16a   :  { %296 = vst.msk [vmem:[#allocation2] sm:$0x3] %vm294_vm3, %v290_v18 }
 0x16b   :  { %307 = dma.vmem_to_hbm [thread:$0]  %s303_s26, 32, %s305_s29, [#allocation3]  }
 0x16c   :  { %385 = dma.done.wait [#allocation3], 32  }
 0x16d   :  { %386 = vsyncadd [#allocation3], 4294967264 }
 0x16e   :  { %312 = vsyncpa [#allocation3], 1 }

</bundles_post_ra>
